<compile_context>
chip_gen: v7x
topology: tpu7x:2x2x1
jax: 0.10.0
libtpu: 0.0.40
codegen_flags: <defaults>
</compile_context>

<pallas_src>
import jax
import jax.numpy as jnp
from jax.experimental import pallas as pl
from jax.experimental.pallas import tpu as pltpu

_QUANT = 16                              # tile quantum (covers f32 + bf16 sublane packing)
_RESIDENT_FEAT_BYTES = 6 * 1024 * 1024   # keep features fully VMEM-resident below this


def _round_up(v, m):
    return ((v + m - 1) // m) * m


def _vmem_budget_bytes():
    # Generation-aware scoped-VMEM budget: ~60% of physical capacity
    # (v7x: 64 MiB -> ~38 MiB; v5e/v6e: 128 MiB -> ~76 MiB), capped at 96 MiB.
    try:
        cap = pltpu.get_tpu_info().vmem_capacity_bytes
    except Exception:
        cap = 64 * 1024 * 1024
    return min(int(cap * 0.6), 96 * 1024 * 1024)


def _make_kernel(project, x_resident, tk):
    def kernel(kmap_ref, nblk_ref, a_ref, feat_ref, *rest):
        if project:
            wt_ref, b_ref, inv_ref, gate_ref, out_ref, acc_ref = rest
        else:
            wt_ref = None
            b_ref, inv_ref, gate_ref, out_ref, acc_ref = rest

        i = pl.program_id(0)
        k = pl.program_id(1)

        @pl.when(k == 0)
        def _():
            acc_ref[...] = jnp.zeros_like(acc_ref)

        # Padded (all-zero) column blocks: compute skipped here, DMA skipped
        # because the A index_map repeats the previous block index.
        @pl.when(k < nblk_ref[i])
        def _():
            a = a_ref[...].astype(jnp.float32)   # bf16 counts in HBM, exact upcast
            if x_resident:
                kb = kmap_ref[i * pl.num_programs(1) + k]
                start = pl.multiple_of(kb * tk, 8)
                feat = feat_ref[pl.ds(start, tk), :]
            else:
                feat = feat_ref[...]
            acc_ref[...] += jnp.dot(a, feat.astype(jnp.float32),
                                    preferred_element_type=jnp.float32)

        @pl.when(k == pl.num_programs(1) - 1)
        def _():
            res = acc_ref[...]
            if project:
                res = jnp.dot(res, wt_ref[...], preferred_element_type=jnp.float32)
            out_ref[...] = (res * inv_ref[...]
                            + gate_ref[...] * b_ref[...]).astype(out_ref.dtype)

    return kernel


def simple_graph_conv(x, edge_index, weight, bias, *,
                      tm=512, tk=2048, a_dtype=jnp.bfloat16):
    """x: [N, Cin], edge_index: [2, E] int (dst, src), weight: [Cout, Cin], bias: [Cout].

    a_dtype is the HBM dtype of the dense adjacency counts; must represent the
    per-pair edge multiplicity exactly (<=256 for bf16). It is upcast to f32
    inside the kernel, so results match the f32 reference bit-for-bit-ish.
    """
    n, c_in = x.shape
    c_out = weight.shape[0]
    f32 = jnp.float32

    cin_p = _round_up(c_in, 128)
    cout_p = _round_up(c_out, 128)

    # Dynamic projection order: run the N^2 aggregation at min(Cin, Cout) width.
    project_in_epilogue = cout_p >= cin_p
    feat_w = cin_p if project_in_epilogue else cout_p

    n16 = _round_up(n, _QUANT)
    budget = _vmem_budget_bytes()
    a_bytes = jnp.dtype(a_dtype).itemsize

    # --- tile selection --------------------------------------------------
    tm = min(tm, n16)
    if n16 >= 2 * _QUANT:                        # keep >=2 row tiles (v7x megacore)
        tm = min(tm, _round_up((n16 + 1) // 2, _QUANT))
    tk = min(tk, n16)

    def _vmem_est(tm_, tk_, resident_):
        npk = _round_up(n, tk_)
        est = 2 * tm_ * tk_ * a_bytes                          # A (double-buffered)
        est += 2 * (npk if resident_ else tk_) * feat_w * 4    # features
        if project_in_epilogue:
            est += 2 * cin_p * cout_p * 4                      # resident W^T
        est += 2 * tm_ * cout_p * 4                            # out (double-buffered)
        est += tm_ * feat_w * 4                                # f32 accumulator
        est += 4 * tm_ * 4 + 2 * cout_p * 4                    # inv / gate / bias
        return est

    while True:
        resident_feat = _round_up(n, tk) * feat_w * 4 <= _RESIDENT_FEAT_BYTES
        if _vmem_est(tm, tk, resident_feat) <= budget or (tm <= 128 and tk <= 256):
            break
        if tk > max(256, tm):
            tk = max(256, _round_up(tk // 2, 128))
        elif tm > 128:
            tm = max(128, _round_up(tm // 2, _QUANT))
        else:
            tk = max(256, _round_up(tk // 2, 128))

    n_pad_m = _round_up(n, tm)
    n_pad_k = _round_up(n, tk)
    n_row_tiles = n_pad_m // tm
    n_col_tiles = n_pad_k // tk

    # --- O(E) glue in plain JAX -------------------------------------------
    row = edge_index[0].astype(jnp.int32)
    col = edge_index[1].astype(jnp.int32)

    adj = jnp.zeros((n_pad_m, n_pad_k), f32).at[row, col].add(1.0)
    deg = jnp.zeros((n_pad_m,), f32).at[row].add(1.0)
    inv_deg = (1.0 / jnp.maximum(deg, 1.0)).reshape(n_pad_m, 1)
    gate = jnp.minimum(deg, 1.0).reshape(n_pad_m, 1)

    x_pad = jnp.zeros((n_pad_k, cin_p), f32).at[:n, :c_in].set(x.astype(f32))
    wt_pad = jnp.zeros((cin_p, cout_p), f32).at[:c_in, :c_out].set(weight.T.astype(f32))
    b_pad = jnp.zeros((1, cout_p), f32).at[0, :c_out].set(bias.astype(f32))

    feat = x_pad if project_in_epilogue else x_pad @ wt_pad
    adj_hbm = adj.astype(a_dtype)           # halve the dominant N^2 HBM stream

    # --- block-sparsity table (scalar-prefetched) --------------------------
    row_blk = row // tm
    col_blk = col // tk
    blk = jnp.zeros((n_row_tiles, n_col_tiles), jnp.bool_).at[row_blk, col_blk].set(True)
    nblk = blk.sum(axis=1).astype(jnp.int32)
    order = jnp.argsort(jnp.logical_not(blk).astype(jnp.int32), axis=1).astype(jnp.int32)
    last = jnp.take_along_axis(order, jnp.maximum(nblk - 1, 0)[:, None], axis=1)
    col_ids = jnp.arange(n_col_tiles, dtype=jnp.int32)
    kmap = jnp.where(col_ids[None, :] < nblk[:, None], order, last)
    kmap = kmap.reshape(-1).astype(jnp.int32)          # flat [n_row_tiles * n_col_tiles]

    # --- specs --------------------------------------------------------------
    def a_index_map(i, k, kmap_, nblk_):
        return (i, kmap_[i * n_col_tiles + k])

    a_spec = pl.BlockSpec((tm, tk), a_index_map)

    if resident_feat:
        feat_spec = pl.BlockSpec((n_pad_k, feat_w), lambda i, k, *_: (0, 0))
    else:
        def feat_index_map(i, k, kmap_, nblk_):
            return (kmap_[i * n_col_tiles + k], 0)
        feat_spec = pl.BlockSpec((tk, feat_w), feat_index_map)

    in_specs = [a_spec, feat_spec]
    operands = [adj_hbm, feat]
    if project_in_epilogue:
        in_specs.append(pl.BlockSpec((cin_p, cout_p), lambda i, k, *_: (0, 0)))
        operands.append(wt_pad)
    in_specs += [
        pl.BlockSpec((1, cout_p), lambda i, k, *_: (0, 0)),   # bias
        pl.BlockSpec((tm, 1), lambda i, k, *_: (i, 0)),       # 1/deg
        pl.BlockSpec((tm, 1), lambda i, k, *_: (i, 0)),       # bias gate
    ]
    operands += [b_pad, inv_deg, gate]

    flops = 2.0 * n_pad_m * n_pad_k * feat_w
    if project_in_epilogue:
        flops += 2.0 * n_pad_m * cin_p * cout_p
    bytes_accessed = (adj_hbm.size * a_bytes
                      + feat.size * 4 * (1 if resident_feat else n_row_tiles)
                      + n_pad_m * cout_p * 4)
    cost = pl.CostEstimate(flops=int(flops), transcendentals=0,
                           bytes_accessed=int(bytes_accessed))

    kernel = _make_kernel(project_in_epilogue, resident_feat, tk)

    out_pad = pl.pallas_call(
        kernel,
        out_shape=jax.ShapeDtypeStruct((n_pad_m, cout_p), f32),
        grid_spec=pltpu.PrefetchScalarGridSpec(
            num_scalar_prefetch=2,
            grid=(n_row_tiles, n_col_tiles),
            in_specs=in_specs,
            out_specs=pl.BlockSpec((tm, cout_p), lambda i, k, *_: (i, 0)),
            scratch_shapes=[pltpu.VMEM((tm, feat_w), jnp.float32)],
        ),
        compiler_params=pltpu.CompilerParams(
            dimension_semantics=("parallel", "arbitrary"),
            vmem_limit_bytes=int(budget),
        ),
        cost_estimate=cost,
    )(kmap, nblk, *operands)

    return out_pad[:n, :c_out].astype(x.dtype)


def reference(x, edge_index, weight, bias):
    xw = x @ weight.T + bias
    row, col = edge_index[0], edge_index[1]
    out = jnp.zeros_like(xw).at[row].add(xw[col])
    deg = jnp.zeros((x.shape[0],), x.dtype).at[row].add(1.0)
    deg = jnp.maximum(deg, 1.0)
    return out / deg[:, None]


if __name__ == "__main__":
    key = jax.random.PRNGKey(0)

    # --- Test 1: small graph, aggregate-then-project path (Cout >= Cin). ---
    k_x, k_w, k_b, k_x2, k_w2, k_b2, k_e2 = jax.random.split(key, 7)
    N, C_IN, C_OUT = 8, 16, 32
    x = jax.random.normal(k_x, (N, C_IN), dtype=jnp.float32)
    weight = jax.random.normal(k_w, (C_OUT, C_IN), dtype=jnp.float32) * 0.1
    bias = jax.random.normal(k_b, (C_OUT,), dtype=jnp.float32) * 0.1
    # Deterministic edge list (dst, src); node 7 isolated to exercise clamp/gate.
    edge_index = jnp.array(
        [[0, 0, 1, 2, 3, 3, 4, 5, 6, 1],
         [1, 2, 0, 0, 4, 5, 3, 3, 6, 2]], dtype=jnp.int32)

    out = jax.block_until_ready(simple_graph_conv(x, edge_index, weight, bias))
    ref = reference(x, edge_index, weight, bias)
    assert out.shape == (N, C_OUT)
    assert jnp.allclose(out, ref, atol=1e-4, rtol=1e-4)

    # --- Test 2: project-first path (Cout < Cin), multiple row tiles. ---
    N2, C_IN2, C_OUT2, E2 = 32, 160, 8, 64
    x2 = jax.random.normal(k_x2, (N2, C_IN2), dtype=jnp.float32)
    weight2 = jax.random.normal(k_w2, (C_OUT2, C_IN2), dtype=jnp.float32) * 0.1
    bias2 = jax.random.normal(k_b2, (C_OUT2,), dtype=jnp.float32) * 0.1
    edge_index2 = jax.random.randint(k_e2, (2, E2), 0, N2, dtype=jnp.int32)

    out2 = jax.block_until_ready(simple_graph_conv(x2, edge_index2, weight2, bias2))
    ref2 = reference(x2, edge_index2, weight2, bias2)
    assert out2.shape == (N2, C_OUT2)
    assert jnp.allclose(out2, ref2, atol=1e-4, rtol=1e-4)

    print("KERNEL_OK")
</pallas_src>

<mosaic_0001>
module attributes {stable_mosaic.version = 11 : i64} {
  func.func @kernel(%arg0: i32, %arg1: i32, %arg2: memref<1xi32, #tpu.memory_space<smem>>, %arg3: memref<1xi32, #tpu.memory_space<smem>>, %arg4: memref<16x16xbf16, #tpu.memory_space<vmem>>, %arg5: memref<16x128xf32, #tpu.memory_space<vmem>>, %arg6: memref<128x128xf32, #tpu.memory_space<vmem>>, %arg7: memref<1x128xf32, #tpu.memory_space<vmem>>, %arg8: memref<16x1xf32, #tpu.memory_space<vmem>>, %arg9: memref<16x1xf32, #tpu.memory_space<vmem>>, %arg10: memref<16x128xf32, #tpu.memory_space<vmem>>, %arg11: memref<16x128xf32, #tpu.memory_space<vmem>>) attributes {dimension_semantics = [#tpu.dimension_semantics<parallel>, #tpu.dimension_semantics<arbitrary>], iteration_bounds = array<i64: 1, 1>, scalar_prefetch = 2 : i64, scratch_operands = 1 : i64, tpu.core_type = #tpu.core_type<tc>, window_params = [{transform_indices = @transform_0, window_bounds = array<i64: 16, 16>}, {pipeline_mode = #tpu.pipeline_mode<synchronous>, transform_indices = @transform_1, window_bounds = array<i64: 16, 128>}, {pipeline_mode = #tpu.pipeline_mode<synchronous>, transform_indices = @transform_2, window_bounds = array<i64: 128, 128>}, {pipeline_mode = #tpu.pipeline_mode<synchronous>, transform_indices = @transform_3, window_bounds = array<i64: 1, 128>}, {transform_indices = @transform_4, window_bounds = array<i64: 16, 1>}, {transform_indices = @transform_5, window_bounds = array<i64: 16, 1>}, {transform_indices = @transform_6, window_bounds = array<i64: 16, 128>}]} {
    %c0_i32 = arith.constant 0 : i32
    %0 = arith.cmpi eq, %arg1, %c0_i32 : i32
    %1 = arith.extui %0 : i1 to i32
    %c0_i32_0 = arith.constant 0 : i32
    %2 = arith.cmpi ne, %1, %c0_i32_0 : i32
    scf.if %2 {
      %cst = arith.constant 0.000000e+00 : f32
      %11 = vector.broadcast %cst : f32 to vector<16x128xf32>
      %c0 = arith.constant 0 : index
      %c0_4 = arith.constant 0 : index
      %12 = vector.load %arg11[%c0, %c0_4] : memref<16x128xf32, #tpu.memory_space<vmem>>, vector<16x128xf32>
      tpu.vector_store %arg11[%c0, %c0_4], %11 {strides = array<i32>} : memref<16x128xf32, #tpu.memory_space<vmem>>, vector<16x128xf32>,
    } else {
    }
    %3 = arith.index_cast %arg0 : i32 to index
    %4 = memref.load %arg3[%3] : memref<1xi32, #tpu.memory_space<smem>>
    %5 = arith.cmpi slt, %arg1, %4 : i32
    %6 = arith.extui %5 : i1 to i32
    %c0_i32_1 = arith.constant 0 : i32
    %7 = arith.cmpi ne, %6, %c0_i32_1 : i32
    scf.if %7 {
      %c0 = arith.constant 0 : index
      %c0_4 = arith.constant 0 : index
      %11 = vector.load %arg4[%c0, %c0_4] : memref<16x16xbf16, #tpu.memory_space<vmem>>, vector<16x16xbf16>
      %12 = arith.extf %11 : vector<16x16xbf16> to vector<16x16xf32>
      %c1_i32 = arith.constant 1 : i32
      %13 = arith.muli %arg0, %c1_i32 : i32
      %14 = arith.addi %13, %arg1 : i32
      %15 = arith.index_cast %14 : i32 to index
      %16 = memref.load %arg2[%15] : memref<1xi32, #tpu.memory_space<smem>>
      %c16_i32 = arith.constant 16 : i32
      %17 = arith.muli %16, %c16_i32 : i32
      %18 = tpu.assume_multiple %17, 8 : i32
      %19 = arith.index_cast %18 : i32 to index
      %c0_5 = arith.constant 0 : index
      %20 = vector.load %arg5[%19, %c0_5] : memref<16x128xf32, #tpu.memory_space<vmem>>, vector<16x128xf32>
      %c0_6 = arith.constant 0 : index
      %c0_7 = arith.constant 0 : index
      %21 = vector.load %arg11[%c0_6, %c0_7] : memref<16x128xf32, #tpu.memory_space<vmem>>, vector<16x128xf32>
      %cst = arith.constant dense<0.000000e+00> : vector<16x128xf32>
      %22 = tpu.matmul %12, %20, %cst {dimension_numbers = #tpu.dot_dimension_numbers<[1], [0], [0], [1], [0, 0, 1, 1], [], []>} : vector<16x16xf32>, vector<16x128xf32>, vector<16x128xf32> -> vector<16x128xf32>
      %23 = arith.addf %21, %22 : vector<16x128xf32>
      %c0_8 = arith.constant 0 : index
      %c0_9 = arith.constant 0 : index
      %24 = vector.load %arg11[%c0_8, %c0_9] : memref<16x128xf32, #tpu.memory_space<vmem>>, vector<16x128xf32>
      tpu.vector_store %arg11[%c0_8, %c0_9], %23 {strides = array<i32>} : memref<16x128xf32, #tpu.memory_space<vmem>>, vector<16x128xf32>,
    } else {
    }
    %c0_i32_2 = arith.constant 0 : i32
    %8 = arith.cmpi eq, %arg1, %c0_i32_2 : i32
    %9 = arith.extui %8 : i1 to i32
    %c0_i32_3 = arith.constant 0 : i32
    %10 = arith.cmpi ne, %9, %c0_i32_3 : i32
    scf.if %10 {
      %c0 = arith.constant 0 : index
      %c0_4 = arith.constant 0 : index
      %11 = vector.load %arg11[%c0, %c0_4] : memref<16x128xf32, #tpu.memory_space<vmem>>, vector<16x128xf32>
      %c0_5 = arith.constant 0 : index
      %c0_6 = arith.constant 0 : index
      %12 = vector.load %arg6[%c0_5, %c0_6] : memref<128x128xf32, #tpu.memory_space<vmem>>, vector<128x128xf32>
      %cst = arith.constant dense<0.000000e+00> : vector<16x128xf32>
      %13 = tpu.matmul %11, %12, %cst {dimension_numbers = #tpu.dot_dimension_numbers<[1], [0], [0], [1], [0, 0, 1, 1], [], []>} : vector<16x128xf32>, vector<128x128xf32>, vector<16x128xf32> -> vector<16x128xf32>
      %c0_7 = arith.constant 0 : index
      %c0_8 = arith.constant 0 : index
      %14 = vector.load %arg8[%c0_7, %c0_8] : memref<16x1xf32, #tpu.memory_space<vmem>>, vector<16x1xf32>
      %15 = vector.broadcast %14 : vector<16x1xf32> to vector<16x128xf32>
      %16 = arith.mulf %13, %15 : vector<16x128xf32>
      %c0_9 = arith.constant 0 : index
      %c0_10 = arith.constant 0 : index
      %17 = vector.load %arg9[%c0_9, %c0_10] : memref<16x1xf32, #tpu.memory_space<vmem>>, vector<16x1xf32>
      %c0_11 = arith.constant 0 : index
      %c0_12 = arith.constant 0 : index
      %18 = vector.load %arg7[%c0_11, %c0_12] : memref<1x128xf32, #tpu.memory_space<vmem>>, vector<1x128xf32>
      %19 = vector.broadcast %17 : vector<16x1xf32> to vector<16x128xf32>
      %20 = vector.broadcast %18 : vector<1x128xf32> to vector<16x128xf32>
      %21 = arith.mulf %19, %20 : vector<16x128xf32>
      %22 = arith.addf %16, %21 : vector<16x128xf32>
      %c0_13 = arith.constant 0 : index
      %c0_14 = arith.constant 0 : index
      %23 = vector.load %arg10[%c0_13, %c0_14] : memref<16x128xf32, #tpu.memory_space<vmem>>, vector<16x128xf32>
      tpu.vector_store %arg10[%c0_13, %c0_14], %22 {strides = array<i32>} : memref<16x128xf32, #tpu.memory_space<vmem>>, vector<16x128xf32>,
    } else {
    }
    return
  }
  func.func @transform_0(%arg0: i32, %arg1: i32, %arg2: memref<1xi32, #tpu.memory_space<smem>>, %arg3: memref<1xi32, #tpu.memory_space<smem>>) -> (i32, i32) {
    %c1_i32 = arith.constant 1 : i32
    %0 = arith.muli %arg0, %c1_i32 : i32
    %1 = arith.addi %0, %arg1 : i32
    %2 = arith.index_cast %1 : i32 to index
    %3 = memref.load %arg2[%2] : memref<1xi32, #tpu.memory_space<smem>>
    %c0_i32 = arith.constant 0 : i32
    return %arg0, %3 : i32, i32
  }
  func.func @transform_1(%arg0: i32, %arg1: i32, %arg2: memref<1xi32, #tpu.memory_space<smem>>, %arg3: memref<1xi32, #tpu.memory_space<smem>>) -> (i32, i32) {
    %c0_i32 = arith.constant 0 : i32
    %c0_i32_0 = arith.constant 0 : i32
    %c0_i32_1 = arith.constant 0 : i32
    return %c0_i32, %c0_i32_0 : i32, i32
  }
  func.func @transform_2(%arg0: i32, %arg1: i32, %arg2: memref<1xi32, #tpu.memory_space<smem>>, %arg3: memref<1xi32, #tpu.memory_space<smem>>) -> (i32, i32) {
    %c0_i32 = arith.constant 0 : i32
    %c0_i32_0 = arith.constant 0 : i32
    %c0_i32_1 = arith.constant 0 : i32
    return %c0_i32, %c0_i32_0 : i32, i32
  }
  func.func @transform_3(%arg0: i32, %arg1: i32, %arg2: memref<1xi32, #tpu.memory_space<smem>>, %arg3: memref<1xi32, #tpu.memory_space<smem>>) -> (i32, i32) {
    %c0_i32 = arith.constant 0 : i32
    %c0_i32_0 = arith.constant 0 : i32
    %c0_i32_1 = arith.constant 0 : i32
    return %c0_i32, %c0_i32_0 : i32, i32
  }
  func.func @transform_4(%arg0: i32, %arg1: i32, %arg2: memref<1xi32, #tpu.memory_space<smem>>, %arg3: memref<1xi32, #tpu.memory_space<smem>>) -> (i32, i32) {
    %c0_i32 = arith.constant 0 : i32
    %c0_i32_0 = arith.constant 0 : i32
    return %arg0, %c0_i32 : i32, i32
  }
  func.func @transform_5(%arg0: i32, %arg1: i32, %arg2: memref<1xi32, #tpu.memory_space<smem>>, %arg3: memref<1xi32, #tpu.memory_space<smem>>) -> (i32, i32) {
    %c0_i32 = arith.constant 0 : i32
    %c0_i32_0 = arith.constant 0 : i32
    return %arg0, %c0_i32 : i32, i32
  }
  func.func @transform_6(%arg0: i32, %arg1: i32, %arg2: memref<1xi32, #tpu.memory_space<smem>>, %arg3: memref<1xi32, #tpu.memory_space<smem>>) -> (i32, i32) {
    %c0_i32 = arith.constant 0 : i32
    %c0_i32_0 = arith.constant 0 : i32
    return %arg0, %c0_i32 : i32, i32
  }
}

</mosaic_0001>

<bundles_post_ra>
// kernel: tpu_custom_call.1
= control target key start
LH: loop header
LB: loop body
LE: loop exit
PB: predicated region body
PF: predicated region fallthrough
CT: control target
= control target key end

     0   :  { %s608_s0 = inlined_call_operand.<no memory space> [shape: s32[1], index: 0, kind: input, shape index: {}]   ;;  %s609_s1 = inlined_call_operand.<no memory space> [shape: s32[1], index: 1, kind: input, shape index: {}]   ;;  %s610_s2 = inlined_call_operand.vmem [shape: bf16[16,16], index: 2, kind: input, shape index: {}]   ;;  %s611_s3 = inlined_call_operand.vmem [shape: f32[16,128], index: 3, kind: input, shape index: {}]   ;;  %s612_s4 = inlined_call_operand.hbm [shape: f32[128,128], index: 4, kind: input, shape index: {}]   ;;  %s613_s5 = inlined_call_operand.vmem [shape: f32[1,128], index: 5, kind: input, shape index: {}]   ;;  %s614_s6 = inlined_call_operand.vmem [shape: f32[16,1], index: 6, kind: input, shape index: {}]   ;;  %s615_s7 = inlined_call_operand.vmem [shape: f32[16,1], index: 7, kind: input, shape index: {}]   ;;  %s616_s8 = inlined_call_operand.hbm [shape: f32[16,128], index: 8, kind: output, shape index: {}]  }
   0x1   :  { %13 = sst [smem:[#allocation4]] %s608_s0 }
   0x2   :  { %15 = vsyncpa [#allocation7], 0 }
   0x3   :  { %16 = vsyncpa [#allocation8], 0  ;;  %s500_s29 = smov [#allocation6]   ;;  %s452_s11 = scalar_lea.hbm %s612_s4, 2048 }
   0x4   :  { %s34_s30 = sshll.u32 %s500_s29, 4  ;;  %p453_p0 = scmp.ne.s32.totalorder %s612_s4, %s452_s11  ;;  %s35_s30 = int_to_ptr.vmem [resolvable:$true] %s34_s30 }
   0x5   :  { %p456_p1 = scmp.lt.u32.totalorder %s452_s11, %s612_s4 }
   0x7   :  { %p458_p2 = pnand %p456_p1, %p453_p0 }
   0x9   :  { %461 = shalt.err (!%p458_p2)
}
   0xa   :  { %s462_s0 = scalar_lea.vmem %s35_s30, 2048  ;;  %p467_p4 = scmp.lt.s32.totalorder %s35_s30, %s35_s30 }
   0xb   :  { %p463_p3 = scmp.ne.s32.totalorder %s35_s30, %s462_s0  ;;  %p468_p5 = scmp.lt.s32.totalorder %s462_s0, %s462_s0 }
   0xd   :  { %p469_p6 = por %p468_p5, %p467_p4 }
   0xf   :  { %p470_p7 = pnand %p469_p6, %p463_p3 }
  0x11   :  { %473 = shalt.err (!%p470_p7)
}
  0x12   :  { %s501_s16 = smov 128   ;;  %s502_s17 = smov 8  }
  0x13   :  { %40 = dma.hbm_to_vmem [thread:$0]  %s612_s4, 2048, %s35_s30, [#allocation7], %s501_s16, %s501_s16, %s502_s17  }
  0x14   :  { %496 = dma.done.wait [#allocation7], 2048  }
  0x15   :  { %497 = vsyncadd [#allocation7], 4294965248  ;;  %s57_s20 = sld [smem:[#allocation4]]  ;;  %v503_v0 = vmov 0.0   ;;  %p335_p9 = scmp.le.s32.totalorder %s609_s1, 0 }
  0x16   :  { %68 = vst [vmem:[#allocation2] sm:$0xff] %v503_v0  ;;  %69 = vst [vmem:[#allocation2 + $0x8] sm:$0xff] %v503_v0  ;;  %s80_s27 = sld [smem:[#allocation4]] (!%p335_p9)  ;;  %vm87_vm0 = vcmask (!%p335_p9), 130048  }
  0x19   :  { %74 = sbr.rel (%p335_p9) target bundleno = 253 (0xfd), region = 37 }
  0x1b   :  { %p58_p8 = scmp.lt.s32.totalorder %s57_s20, 0 }
  0x1c   :  { %s336_s4 = sshll.u32 (!%p335_p9), %s80_s27, 4 }
  0x1d   :  { %s618_s20 = smov (!%p58_p8, %s57_s20), 0  ;;  %s82_s30 = scalar_lea.vmem (!%p335_p9), %s611_s3, %s336_s4  ;;  %v86_v7 = vld [vmem:[#allocation2 + $0x8] sm:$0xff] (!%p335_p9)  ;;  %v85_v8 = vld [vmem:[#allocation2] sm:$0xff] (!%p335_p9) }
  0x1e   :  { %s333_s21 = sshll.u32 %s618_s20, 2  ;;  %v83_v3 = vld [vmem:[%s82_s30] sm:$0xff] (!%p335_p9)  ;;  %v84_v4 = vld [vmem:[%s82_s30 + $0x8] sm:$0xff] (!%p335_p9) }
  0x1f   :  { %s61_s24 = scalar_lea.vmem %s610_s2, %s333_s21  ;;  %v408_v5 = vpack.c.bf16 (!%p335_p9), %v84_v4, %v83_v3 }
  0x20   :  { %v341_v1 = vld [vmem:[%s61_s24] sm:$0xff]  }
  0x21   :  { %v342_v2 = vunpack.c.l.bf16 %v341_v1  ;;  %409 = vmatprep.subr.bf16.mxu0 %v408_v5  ;;  %v343_v6 = vunpack.c.h.bf16 %v341_v1 }
  0x22   :  { %411 = vmatpush3.bf16.msra.mxu0 %v408_v5 }
  0x23   :  { %370 = vmatprep.mubr.msk.f32.mxu0 %vm87_vm0, %v342_v2 }
  0x25   :  { %371 = vmatmul.mubr.msk.f32.vlgmr.msra.gmra.mrb[0].mxu0 %vm87_vm0, %v343_v6 }
  0xf8   :  { %v372_v9 = vpop.f32.mrb[0].mxu0 }
  0xf9   :  { %v170_v10 = vadd.f32 %v372_v9, %v86_v7  ;;  %v160_v11 = vpop.f32.mrb[1].mxu0 }
  0xfa   :  { %v169_v12 = vadd.f32 %v160_v11, %v85_v8 }
  0xfb   :  { %172 = vst [vmem:[#allocation2 + $0x8] sm:$0xff] %v170_v10 }
  0xfc   :  { %171 = vst [vmem:[#allocation2] sm:$0xff] %v169_v12 }
  0xfd PF:  { %v178_v13 = vld [vmem:[#allocation6] sm:$0xff]  ;;  %v179_v14 = vld [vmem:[#allocation6 + $0x8] sm:$0xff]  ;;  %v180_v15 = vld [vmem:[#allocation6 + $0x10] sm:$0xff]  ;;  %v504_v18 = vmov 0   ;;  %s505_s14 = smov [#allocation9]  }
  0xfe   :  { %v412_v16 = vpack.c.bf16 %v179_v14, %v178_v13  ;;  %v181_v17 = vld [vmem:[#allocation6 + $0x18] sm:$0xff]  ;;  %451 = vset.pattern.permute.xlu1 %v504_v18  ;;  %450 = vset.pattern.permute.xlu0 %v504_v18  ;;  %v182_v20 = vld [vmem:[#allocation6 + $0x20] sm:$0xff]  ;;  %v183_v21 = vld [vmem:[#allocation6 + $0x28] sm:$0xff]  ;;  %s313_s15 = sshll.u32 %s505_s14, 4  ;;  %s314_s15 = int_to_ptr.vmem [resolvable:$true] %s313_s15 }
  0xff   :  { %v416_v19 = vpack.c.bf16 %v181_v17, %v180_v15  ;;  %v420_v22 = vpack.c.bf16 %v183_v21, %v182_v20  ;;  %v184_v23 = vld [vmem:[#allocation6 + $0x30] sm:$0xff]  ;;  %v185_v25 = vld [vmem:[#allocation6 + $0x38] sm:$0xff]  ;;  %v186_v31 = vld [vmem:[#allocation6 + $0x40] sm:$0xff]  ;;  %s474_s0 = scalar_lea.vmem %s314_s15, 256  ;;  %p479_p11 = scmp.lt.s32.totalorder %s314_s15, %s314_s15 }
 0x100   :  { %413 = vmatprep.subr.bf16.mxu0 %v412_v16  ;;  %v283_v26 = vld [vmem:[%s615_s7] sm:$0xff]  ;;  %v284_v28 = vld [vmem:[%s615_s7 + $0x8] sm:$0xff]  ;;  %v424_v30 = vpack.c.bf16 %v185_v25, %v184_v23  ;;  %v187_v32 = vld [vmem:[#allocation6 + $0x48] sm:$0xff]  ;;  %p475_p10 = scmp.ne.s32.totalorder %s314_s15, %s474_s0  ;;  %p480_p12 = scmp.lt.s32.totalorder %s474_s0, %s474_s0 }
 0x101   :  { %415 = vmatpush3.bf16.msra.mxu0 %v412_v16  ;;  %v269_v27 = vld [vmem:[%s614_s6] sm:$0xff]  ;;  %288 = vperm.xlu1 %451, %v283_v26   ;;  %v270_v29 = vld [vmem:[%s614_s6 + $0x8] sm:$0xff]  ;;  %v428_v33 = vpack.c.bf16 %v187_v32, %v186_v31  ;;  %v190_v37 = vld [vmem:[#allocation6 + $0x60] sm:$0xff] }
 0x102   :  { %417 = vmatprep.subr.bf16.mxu0 %v416_v19  ;;  %273 = vperm.xlu0 %450, %v269_v27   ;;  %v188_v34 = vld [vmem:[#allocation6 + $0x50] sm:$0xff]  ;;  %v189_v35 = vld [vmem:[#allocation6 + $0x58] sm:$0xff]  ;;  %v191_v38 = vld [vmem:[#allocation6 + $0x68] sm:$0xff]  ;;  %p481_p13 = por %p480_p12, %p479_p11 }
 0x103   :  { %v176_v24 = vld [vmem:[#allocation2] sm:$0xff]  ;;  %v432_v36 = vpack.c.bf16 %v189_v35, %v188_v34  ;;  %v436_v39 = vpack.c.bf16 %v191_v38, %v190_v37  ;;  %v193_v41 = vld [vmem:[#allocation6 + $0x78] sm:$0xff] }
 0x104   :  { %405 = vmatprep.mubr.f32.mxu0 %v176_v24  ;;  %v192_v40 = vld [vmem:[#allocation6 + $0x70] sm:$0xff]  ;;  %v177_v43 = vld [vmem:[#allocation2 + $0x8] sm:$0xff]  ;;  %p482_p0 = pnand %p481_p13, %p475_p10 }
 0x105   :  { %419 = vmatpush3.bf16.msra.mxu0 %v416_v19  ;;  %293 = vperm.xlu1 %451, %v284_v28   ;;  %v440_v42 = vpack.c.bf16 %v193_v41, %v192_v40  ;;  %v339_v46 = vld [vmem:[%s613_s5] ss:$0 sm:$0xff] }
 0x106   :  { %421 = vmatprep.subr.bf16.mxu0 %v420_v22  ;;  %278 = vperm.xlu0 %450, %v270_v29  }
 0x109   :  { %423 = vmatpush3.bf16.msra.mxu0 %v420_v22 }
 0x10a   :  { %425 = vmatprep.subr.bf16.mxu0 %v424_v30 }
 0x10d   :  { %427 = vmatpush3.bf16.msra.mxu0 %v424_v30 }
 0x10e   :  { %429 = vmatprep.subr.bf16.mxu0 %v428_v33 }
 0x111   :  { %431 = vmatpush3.bf16.msra.mxu0 %v428_v33 }
 0x112   :  { %433 = vmatprep.subr.bf16.mxu0 %v432_v36 }
 0x115   :  { %435 = vmatpush3.bf16.msra.mxu0 %v432_v36 }
 0x116   :  { %437 = vmatprep.subr.bf16.mxu0 %v436_v39 }
 0x119   :  { %439 = vmatpush3.bf16.msra.mxu0 %v436_v39 }
 0x11a   :  { %441 = vmatprep.subr.bf16.mxu0 %v440_v42 }
 0x11d   :  { %443 = vmatpush3.bf16.msra.mxu0 %v440_v42 }
 0x120   :  { %406 = vmatmul.mubr.f32.vlgmr.msra.gmra.mrb[0].mxu0 %v177_v43 }
 0x180   :  { %v289_v44 = vpop.permute.xlu1 %288 }
 0x181   :  { %v274_v45 = vpop.permute.xlu0 %273  ;;  %v302_v53 = vmul.f32 %v339_v46, %v289_v44 }
 0x184   :  { %v294_v47 = vpop.permute.xlu1 %293 }
 0x185   :  { %v279_v48 = vpop.permute.xlu0 %278  ;;  %v303_v50 = vmul.f32 %v339_v46, %v294_v47 }
 0x1f3   :  { %v407_v49 = vpop.f32.mrb[0].mxu0 }
 0x1f4   :  { %v282_v51 = vmul.f32 %v407_v49, %v279_v48  ;;  %v260_v52 = vpop.f32.mrb[1].mxu0 }
 0x1f5   :  { %v281_v54 = vmul.f32 %v274_v45, %v260_v52 }
 0x1f6   :  { %v305_v55 = vadd.f32 %v303_v50, %v282_v51 }
 0x1f7   :  { %v304_v56 = vadd.f32 %v302_v53, %v281_v54 }
 0x1f8   :  { %307 = vst [vmem:[#allocation9 + $0x8] sm:$0xff] %v305_v55 }
 0x1f9   :  { %306 = vst [vmem:[#allocation9] sm:$0xff] %v304_v56 }
 0x1fa   :  { %485 = shalt.err (!%p482_p0)
}
 0x1fb   :  { %s486_s19 = scalar_lea.hbm %s616_s8, 256 }
 0x1fc   :  { %p487_p1 = scmp.ne.s32.totalorder %s616_s8, %s486_s19  ;;  %p490_p2 = scmp.lt.u32.totalorder %s486_s19, %s616_s8 }
 0x1fe   :  { %p492_p3 = pnand %p490_p2, %p487_p1 }
 0x200   :  { %495 = shalt.err (!%p492_p3)
}
 0x201   :  { %319 = dma.vmem_to_hbm [thread:$0]  %s314_s15, 256, %s616_s8, [#allocation8], %s501_s16, %s501_s16, %s502_s17  }
 0x202   :  { %498 = dma.done.wait [#allocation8], 256  }
 0x203   :  { %499 = vsyncadd [#allocation8], 4294967040 }
 0x204   :  { %323 = vsyncpa [#allocation7], 1 }
 0x205   :  { %324 = vsyncpa [#allocation8], 1 }

</bundles_post_ra>
